<compile_context>
chip_gen: v7x
topology: tpu7x:2x2x1
jax: 0.10.0
libtpu: 0.0.40
codegen_flags: <defaults>
</compile_context>

<pallas_src>
import functools

import numpy as np
import jax
import jax.numpy as jnp
from jax.experimental import pallas as pl
from jax.experimental.pallas import tpu as pltpu


# ----------------------------------------------------------------------------
# Pallas kernel: unconditional elementwise affine transform.
#   params_ref : SMEM float32[2] (scalar-prefetch) -> [scale, shift]
#   x_ref/o_ref: VMEM (tile_r, lane_w) tiles
# ----------------------------------------------------------------------------
def affine_kernel(params_ref, x_ref, o_ref):
    o_ref[...] = (x_ref[...] * params_ref[0] + params_ref[1]).astype(o_ref.dtype)


_MIB = 1 << 20
# sublane granularity by itemsize: f32 -> 8, bf16 -> 16, int8/fp8 -> 32
_SUBLANE = {4: 8, 2: 16, 1: 32}


def _device_is_v7x():
    try:
        return "v7" in jax.devices()[0].device_kind.lower()
    except Exception:
        return False


_IS_V7X = _device_is_v7x()
_CORE_PARALLEL_OK = True  # flipped to False if CORE_PARALLEL fails to lower


def _choose_lane_width(n_elems):
    """Largest lane width (<=2048, multiple of 128) that divides n_elems.

    Returns (lane_w, pad).  pad > 0 only if n_elems is not a multiple of 128,
    in which case a (rare) padded fallback path is taken.
    """
    if n_elems % 128 != 0:
        pad = (-n_elems) % 128
        return 128, pad
    m = n_elems // 128
    for f in range(min(16, m), 0, -1):
        if m % f == 0:
            return 128 * f, 0
    return 128, 0


@functools.partial(
    jax.jit, static_argnames=("lane_w", "tile_r", "pad", "core_parallel")
)
def _apply_affine_jit(x, scale, shift, *, lane_w, tile_r, pad, core_parallel):
    orig_shape = x.shape
    dtype = x.dtype
    n_elems = x.size
    itemsize = jnp.dtype(dtype).itemsize

    flat = x.reshape(-1)
    if pad:
        # TODO(synk): fallback only when total size is not a multiple of 128;
        # this costs one extra pad + slice pass outside the kernel.
        flat = jnp.pad(flat, (0, pad))
    rows = (n_elems + pad) // lane_w
    x2 = flat.reshape(rows, lane_w)

    params = jnp.stack([scale, shift]).astype(jnp.float32)

    grid_r = pl.cdiv(rows, tile_r)  # partial last block: masked writes, OK elementwise
    dim_sem = (pltpu.CORE_PARALLEL if core_parallel else pltpu.PARALLEL,)

    out2 = pl.pallas_call(
        affine_kernel,
        out_shape=jax.ShapeDtypeStruct((rows, lane_w), dtype),
        grid_spec=pltpu.PrefetchScalarGridSpec(
            num_scalar_prefetch=1,
            grid=(grid_r,),
            in_specs=[pl.BlockSpec((tile_r, lane_w), lambda i, p: (i, 0))],
            out_specs=pl.BlockSpec((tile_r, lane_w), lambda i, p: (i, 0)),
        ),
        compiler_params=pltpu.CompilerParams(dimension_semantics=dim_sem),
        cost_estimate=pl.CostEstimate(
            flops=2 * int(n_elems),
            transcendentals=0,
            bytes_accessed=2 * int(n_elems) * int(itemsize),
        ),
    )(params, x2)

    out = out2.reshape(-1)
    if pad:
        out = out[:n_elems]
    return out.reshape(orig_shape)


def apply_affine(x, scale, shift):
    """y = x * scale + shift, lane-dense tiled elementwise Pallas kernel."""
    global _CORE_PARALLEL_OK

    n_elems = int(np.prod(x.shape))
    itemsize = int(jnp.dtype(x.dtype).itemsize)
    sublane = _SUBLANE.get(itemsize, 8)

    lane_w, pad = _choose_lane_width(n_elems)
    rows = (n_elems + pad) // lane_w

    # Tile target: ~4 MiB on v7x, ~1 MiB on v5e/v6e (double-buffered in+out
    # stays within every generation's scoped-VMEM default).
    target_bytes = 4 * _MIB if _IS_V7X else _MIB
    target_rows = max(sublane, (target_bytes // (lane_w * itemsize)) // sublane * sublane)

    if rows <= target_rows:
        tile_r = rows           # single block == full array dims (always legal)
    else:
        tile_r = target_rows    # multiple of sublane; last block may be partial

    grid_r = int(pl.cdiv(rows, tile_r))
    core_parallel = _IS_V7X and _CORE_PARALLEL_OK and grid_r >= 2

    scale = jnp.float32(scale)
    shift = jnp.float32(shift)
    try:
        return _apply_affine_jit(
            x, scale, shift,
            lane_w=lane_w, tile_r=tile_r, pad=pad, core_parallel=core_parallel,
        )
    except Exception:
        if not core_parallel:
            raise
        # CORE_PARALLEL failed to lower on this chip/config: fall back once.
        _CORE_PARALLEL_OK = False
        return _apply_affine_jit(
            x, scale, shift,
            lane_w=lane_w, tile_r=tile_r, pad=pad, core_parallel=False,
        )


# ----------------------------------------------------------------------------
# Concrete block standing in for _AbstractBlock (deterministic parameters).
# ----------------------------------------------------------------------------
class AffineIntensityBlock:
    """transform(x) = x * scale + shift  (parameters of shape (1,), no grad)."""

    def __init__(self, scale=1.5, shift=0.25):
        self.scale = np.float32(scale)
        self.shift = np.float32(shift)

    def get_info(self):
        # mirrors _AbstractBlock.get_info(): name -> squeezed float numpy value
        return {"scale": np.float32(self.scale), "shift": np.float32(self.shift)}

    def update_info(self, info):
        name = self.__class__.__name__
        if name not in info:
            info[name] = {}
        info[name].update(self.get_info())
        info[name].update({"applied": True})

    def transform(self, image):
        return apply_affine(image, self.scale, self.shift)

    def __call__(self, data):
        image, info = data
        image = self.transform(image)
        self.update_info(info)
        return (image, info)


# ----------------------------------------------------------------------------
# Sometimes wrapper (Python glue mirroring Sometimes.forward).
# data = (image_NCHW, info_dict)
# ----------------------------------------------------------------------------
class Sometimes:
    def __init__(self, block, p, seed=0):
        self.block = block
        self.block_name = self.block.__class__.__name__
        self.p = float(p)
        # host-side RNG for the coin flip: no device->host sync on dispatch
        # TODO(synk): not bit-reproducible vs torch.rand(1); same distribution.
        self._rng = np.random.default_rng(seed)

    def forward(self, data):
        transformation_applied = bool(self._rng.random() < self.p)
        if transformation_applied:
            data = self.block(data)
        else:
            image, info = data
            # TODO(synk): dict-of-scalars metadata has no tensor/Pallas
            # equivalent; handled in host glue (matches PyTorch reference).
            self.block.update_info(info)
            for k in info[self.block_name]:
                info[self.block_name][k] = info[self.block_name][k] + np.nan
            info[self.block_name]["applied"] = False
            data = (image, info)
        return data


# ----------------------------------------------------------------------------
# main
# ----------------------------------------------------------------------------
if __name__ == "__main__":
    key = jax.random.PRNGKey(0)
    k_img, k_big, k_part, k_odd = jax.random.split(key, 4)

    block = AffineIntensityBlock()
    SCALE, SHIFT = np.float32(1.5), np.float32(0.25)

    # --- small image consistent with the module (NCHW) -----------------------
    B, C, H, W = 2, 4, 16, 16
    image = jax.random.normal(k_img, (B, C, H, W), dtype=jnp.float32)
    image_np = np.asarray(image)

    # 1) applied branch (p=1.0): kernel runs, info gets parameters + applied.
    s_always = Sometimes(AffineIntensityBlock(), p=1.0, seed=0)
    out_img, info_a = s_always.forward((image, {}))
    out_img = jax.block_until_ready(out_img)
    np.testing.assert_allclose(
        np.asarray(out_img), image_np * SCALE + SHIFT, rtol=1e-6, atol=1e-6
    )
    assert info_a[s_always.block_name]["applied"] is True

    # 2) not-applied branch (p=0.0): no kernel launch, image passes through.
    s_never = Sometimes(AffineIntensityBlock(), p=0.0, seed=0)
    out_img2, info_n = s_never.forward((image, {}))
    out_img2 = jax.block_until_ready(out_img2)
    np.testing.assert_allclose(np.asarray(out_img2), image_np, rtol=0, atol=0)
    assert info_n[s_never.block_name]["applied"] is False
    assert np.isnan(info_n[s_never.block_name]["scale"])
    assert np.isnan(info_n[s_never.block_name]["shift"])

    # 3) multi-tile (grid > 1) lane-dense path, no padding.
    big = jax.random.normal(k_big, (4, 4, 64, 512), dtype=jnp.float32)
    out_big = jax.block_until_ready(apply_affine(big, SCALE, SHIFT))
    np.testing.assert_allclose(
        np.asarray(out_big), np.asarray(big) * SCALE + SHIFT, rtol=1e-6, atol=1e-6
    )

    # 4) partial (masked) last block: rows not a multiple of tile_r.
    part = jax.random.normal(k_part, (3, 4, 64, 512), dtype=jnp.float32)
    out_part = jax.block_until_ready(apply_affine(part, SCALE, SHIFT))
    np.testing.assert_allclose(
        np.asarray(out_part), np.asarray(part) * SCALE + SHIFT, rtol=1e-6, atol=1e-6
    )

    # 5) odd-sized fallback path (total not a multiple of 128 -> pad branch).
    odd = jax.random.normal(k_odd, (2, 3, 5, 7), dtype=jnp.float32)
    out_odd = jax.block_until_ready(apply_affine(odd, SCALE, SHIFT))
    np.testing.assert_allclose(
        np.asarray(out_odd), np.asarray(odd) * SCALE + SHIFT, rtol=1e-6, atol=1e-6
    )

    print("KERNEL_OK")
</pallas_src>

<mosaic_0001>
module attributes {stable_mosaic.version = 11 : i64} {
  func.func @affine_kernel(%arg0: i32, %arg1: memref<2xf32, #tpu.memory_space<smem>>, %arg2: memref<1x2048xf32, #tpu.memory_space<vmem>>, %arg3: memref<1x2048xf32, #tpu.memory_space<vmem>>) attributes {dimension_semantics = [#tpu.dimension_semantics<parallel>], iteration_bounds = array<i64: 1>, scalar_prefetch = 1 : i64, scratch_operands = 0 : i64, tpu.core_type = #tpu.core_type<tc>, window_params = [{transform_indices = @transform_0, window_bounds = array<i64: 1, 2048>}, {transform_indices = @transform_1, window_bounds = array<i64: 1, 2048>}]} {
    %c0 = arith.constant 0 : index
    %c0_0 = arith.constant 0 : index
    %0 = vector.load %arg2[%c0, %c0_0] : memref<1x2048xf32, #tpu.memory_space<vmem>>, vector<1x2048xf32>
    %c0_1 = arith.constant 0 : index
    %1 = memref.load %arg1[%c0_1] : memref<2xf32, #tpu.memory_space<smem>>
    %2 = vector.broadcast %1 : f32 to vector<1x2048xf32>
    %3 = arith.mulf %0, %2 : vector<1x2048xf32>
    %c1 = arith.constant 1 : index
    %4 = memref.load %arg1[%c1] : memref<2xf32, #tpu.memory_space<smem>>
    %5 = vector.broadcast %4 : f32 to vector<1x2048xf32>
    %6 = arith.addf %3, %5 : vector<1x2048xf32>
    %c0_2 = arith.constant 0 : index
    %c0_3 = arith.constant 0 : index
    %7 = vector.load %arg3[%c0_2, %c0_3] : memref<1x2048xf32, #tpu.memory_space<vmem>>, vector<1x2048xf32>
    tpu.vector_store %arg3[%c0_2, %c0_3], %6 {strides = array<i32>} : memref<1x2048xf32, #tpu.memory_space<vmem>>, vector<1x2048xf32>,
    return
  }
  func.func @transform_0(%arg0: i32, %arg1: memref<2xf32, #tpu.memory_space<smem>>) -> (i32, i32) {
    %c0_i32 = arith.constant 0 : i32
    %c0_i32_0 = arith.constant 0 : i32
    return %arg0, %c0_i32 : i32, i32
  }
  func.func @transform_1(%arg0: i32, %arg1: memref<2xf32, #tpu.memory_space<smem>>) -> (i32, i32) {
    %c0_i32 = arith.constant 0 : i32
    %c0_i32_0 = arith.constant 0 : i32
    return %arg0, %c0_i32 : i32, i32
  }
}

</mosaic_0001>

<bundles_post_ra>
// kernel: _apply_affine_jit.1
= control target key start
LH: loop header
LB: loop body
LE: loop exit
PB: predicated region body
PF: predicated region fallthrough
CT: control target
= control target key end

     0   :  { %s78_s0 = inlined_call_operand.vmem [shape: f32[2], index: 0, kind: input, shape index: {}]   ;;  %s79_s1 = inlined_call_operand.vmem [shape: f32[1,2048], index: 1, kind: input, shape index: {}]   ;;  %s80_s2 = inlined_call_operand.vmem [shape: f32[1,2048], index: 2, kind: output, shape index: {}]  }
   0x1   :  { %s7_s11 = sshll.u32 %s78_s0, 4  ;;  %s8_s11 = int_to_ptr.vmem [resolvable:$true] %s7_s11 }
   0x2   :  { %s33_s12 = scalar_lea.vmem %s8_s11, 16  ;;  %p38_p1 = scmp.lt.s32.totalorder %s8_s11, %s8_s11 }
   0x3   :  { %p34_p0 = scmp.ne.s32.totalorder %s8_s11, %s33_s12  ;;  %p39_p2 = scmp.lt.s32.totalorder %s33_s12, %s33_s12 }
   0x5   :  { %p40_p3 = por %p39_p2, %p38_p1 }
   0x7   :  { %p41_p4 = pnand %p40_p3, %p34_p0 }
   0x9   :  { %44 = shalt.err (!%p41_p4)  }
   0xa   :  { %s47_s13 = smov [#allocation3]  }
   0xb   :  { %10 = dma.vmem_to_smem %s8_s11, 16, %s47_s13, [#allocation2] }
   0xc   :  { %45 = dma.done.wait [#allocation2], 16 }
   0xd   :  { %46 = vsyncadd [#allocation2], 4294967280 }
   0xe   :  { %12 = sfence }
   0xf   :  { %s17_s14 = sld [smem:[#allocation3]]  ;;  %s31_s15 = sld [smem:[#allocation3 + $0x1]]  ;;  %v15_v0 = vld [vmem:[%s79_s1] sm:$0xff]  ;;  %v16_v1 = vld [vmem:[%s79_s1 + $0x8] sm:$0xff] }
  0x15   :  { %v18_v2 = vstv %s17_s14  ;;  %v22_v3 = vstv %s31_s15 }
  0x16   :  { %v19_v4 = vmul.f32 %v18_v2, %v15_v0  ;;  %v20_v5 = vmul.f32 %v18_v2, %v16_v1 }
  0x18   :  { %v23_v6 = vadd.f32 %v22_v3, %v19_v4  ;;  %v24_v7 = vadd.f32 %v22_v3, %v20_v5 }
  0x1a   :  { %25 = vst [vmem:[%s80_s2] sm:$0xff] %v23_v6  ;;  %26 = vst [vmem:[%s80_s2 + $0x8] sm:$0xff] %v24_v7 }

</bundles_post_ra>
